<compile_context>
chip_gen: v7x
topology: tpu7x:2x2x1
jax: 0.10.0
libtpu: 0.0.40
codegen_flags: <defaults>
</compile_context>

<pallas_src>
import jax
import jax.numpy as jnp
from jax.experimental import pallas as pl
from jax.experimental.pallas import tpu as pltpu

H1 = 128
H2 = 256
LANE = 128


def _round_up(x, m):
    return (x + m - 1) // m * m


def mlp_kernel(x_ref, w1_ref, w2_ref, w3_ref, b_ref, o_ref):
    # b_ref is the packed bias vector: [b1 (H1) | b2 (H2) | b3 (out_pad)], f32.
    b1 = b_ref[:, 0:H1]
    b2 = b_ref[:, H1:H1 + H2]
    b3 = b_ref[:, H1 + H2:]

    # MXU inputs in bf16, accumulation in f32; bias-add + ReLU in f32 on the
    # VPU, then immediately cast back to bf16 to halve live intermediates.
    x = x_ref[...].astype(jnp.bfloat16)

    h1 = jnp.dot(x, w1_ref[...], preferred_element_type=jnp.float32)
    h1 = jnp.maximum(h1 + b1, 0.0).astype(jnp.bfloat16)

    h2 = jnp.dot(h1, w2_ref[...], preferred_element_type=jnp.float32)
    h2 = jnp.maximum(h2 + b2, 0.0).astype(jnp.bfloat16)

    out = jnp.dot(h2, w3_ref[...], preferred_element_type=jnp.float32)
    o_ref[...] = (out + b3).astype(o_ref.dtype)  # lane-dense (padded) store


def prepare_kernel_params(params):
    """One-time transform of f32 'PyTorch-layout' params into kernel layout:
    bf16 weights, w3/b3 zero-padded to a lane-dense output, biases packed."""
    output_size = params["w3"].shape[1]
    out_pad = _round_up(max(output_size, LANE), LANE)

    w3 = params["w3"]
    b3 = params["b3"]
    if out_pad != output_size:
        w3 = jnp.pad(w3, ((0, 0), (0, out_pad - output_size)))
        b3 = jnp.pad(b3, ((0, 0), (0, out_pad - output_size)))

    return {
        "w1": params["w1"].astype(jnp.bfloat16),
        "w2": params["w2"].astype(jnp.bfloat16),
        "w3": w3.astype(jnp.bfloat16),
        "b_packed": jnp.concatenate(
            [params["b1"], params["b2"], b3], axis=1).astype(jnp.float32),
        "output_size": output_size,
        "out_pad": out_pad,
    }


def _pick_block_batch(batch):
    # Big tiles for throughput (per-step overhead ~0.35 us; 512 rows ~ roofline),
    # but keep >=2 roughly balanced grid steps when possible so the "parallel"
    # batch axis shards across both v7x TensorCores.
    tb = min(512, _round_up(batch, 8))
    if batch > 8:
        tb = min(tb, _round_up(pl.cdiv(batch, 2), 8))
    return max(8, tb)


def nn_policy_network_forward(x, kparams, *, block_batch=None,
                              out_dtype=jnp.float32, return_padded=False):
    """x: [batch, input_size] (f32 or bf16). kparams: prepare_kernel_params output.

    out_dtype=jnp.bfloat16 halves output HBM writeback on bandwidth-bound shapes.
    return_padded=True skips the column slice and returns [batch, out_pad]
    (padded columns are exactly zero)."""
    batch, input_size = x.shape
    output_size = kparams["output_size"]
    out_pad = kparams["out_pad"]

    if block_batch is None:
        block_batch = _pick_block_batch(batch)
    else:
        # Correctness: (8,128) tiling constraint on the x/out BlockSpecs.
        block_batch = max(8, _round_up(block_batch, 8))

    w1, w2, w3, b_packed = (kparams["w1"], kparams["w2"],
                            kparams["w3"], kparams["b_packed"])

    # No batch padding: Pallas handles the partial last block (OOB reads are
    # scratch rows, OOB writes are discarded; rows are independent).
    grid = (pl.cdiv(batch, block_batch),)

    out = pl.pallas_call(
        mlp_kernel,
        out_shape=jax.ShapeDtypeStruct((batch, out_pad), out_dtype),
        grid_spec=pltpu.PrefetchScalarGridSpec(
            num_scalar_prefetch=0,
            grid=grid,
            in_specs=[
                # x: tiled over the batch axis.
                pl.BlockSpec((block_batch, input_size), lambda i: (i, 0)),
                # Weights / packed biases: full arrays, VMEM-resident across
                # all grid steps (same block index every iteration).
                pl.BlockSpec(w1.shape, lambda i: (0, 0)),
                pl.BlockSpec(w2.shape, lambda i: (0, 0)),
                pl.BlockSpec(w3.shape, lambda i: (0, 0)),
                pl.BlockSpec(b_packed.shape, lambda i: (0, 0)),
            ],
            out_specs=pl.BlockSpec((block_batch, out_pad), lambda i: (i, 0)),
        ),
        compiler_params=pltpu.CompilerParams(
            dimension_semantics=("parallel",),  # shard batch across v7x TCs
        ),
    )(x, w1, w2, w3, b_packed)

    if return_padded:
        return out
    return out[:, :output_size]


def init_params(input_size, output_size, key):
    """Deterministic synthetic parameters matching nn.Linear shapes
    (stored transposed: [in, out]); biases kept 2-D (1, out) for TPU layout."""
    ks = jax.random.split(key, 6)

    def lin(kw, kb, fan_in, fan_out):
        bound = 1.0 / jnp.sqrt(fan_in)
        w = jax.random.uniform(kw, (fan_in, fan_out), jnp.float32, -bound, bound)
        b = jax.random.uniform(kb, (1, fan_out), jnp.float32, -bound, bound)
        return w, b

    w1, b1 = lin(ks[0], ks[1], input_size, H1)
    w2, b2 = lin(ks[2], ks[3], H1, H2)
    w3, b3 = lin(ks[4], ks[5], H2, output_size)
    return {"w1": w1, "b1": b1, "w2": w2, "b2": b2, "w3": w3, "b3": b3}


def reference_forward_f32(x, p):
    h1 = jnp.maximum(x @ p["w1"] + p["b1"], 0.0)
    h2 = jnp.maximum(h1 @ p["w2"] + p["b2"], 0.0)
    return h2 @ p["w3"] + p["b3"]


def reference_forward_bf16(x, p):
    """Mirrors the kernel numerics: bf16 MXU operands, f32 accum, bf16
    recast of intermediates after bias+ReLU."""
    bf = jnp.bfloat16
    h1 = jnp.dot(x.astype(bf), p["w1"].astype(bf),
                 preferred_element_type=jnp.float32) + p["b1"]
    h1 = jnp.maximum(h1, 0.0).astype(bf)
    h2 = jnp.dot(h1, p["w2"].astype(bf),
                 preferred_element_type=jnp.float32) + p["b2"]
    h2 = jnp.maximum(h2, 0.0).astype(bf)
    return jnp.dot(h2, p["w3"].astype(bf),
                   preferred_element_type=jnp.float32) + p["b3"]


if __name__ == "__main__":
    input_size = 32
    output_size = 16
    batch = 8

    key = jax.random.PRNGKey(0)
    kx, kp, kx2 = jax.random.split(key, 3)
    x = jax.random.normal(kx, (batch, input_size), jnp.float32)
    params = init_params(input_size, output_size, kp)
    kparams = prepare_kernel_params(params)

    # Small batch (single grid step, tile == 8 rows).
    out = nn_policy_network_forward(x, kparams)
    out = jax.block_until_ready(out)
    assert out.shape == (batch, output_size)

    ref_bf16 = reference_forward_bf16(x, params)   # mirrors kernel numerics
    ref_f32 = reference_forward_f32(x, params)     # pure-f32 sanity check
    assert jnp.allclose(out, ref_bf16, atol=1e-4, rtol=1e-4)
    assert jnp.allclose(out, ref_f32, atol=5e-2, rtol=5e-2)

    # Larger, non-tile-aligned batch: 2 grid steps, partial last block
    # (no wrapper-side batch padding).
    batch2 = 260
    x2 = jax.random.normal(kx2, (batch2, input_size), jnp.float32)
    out2 = jax.block_until_ready(nn_policy_network_forward(x2, kparams))
    assert out2.shape == (batch2, output_size)
    assert jnp.allclose(out2, reference_forward_bf16(x2, params),
                        atol=1e-4, rtol=1e-4)

    # bf16-output / padded-output fast path (padded columns are exactly zero).
    out3 = jax.block_until_ready(
        nn_policy_network_forward(x2, kparams, out_dtype=jnp.bfloat16,
                                  return_padded=True))
    assert out3.shape == (batch2, kparams["out_pad"])
    assert out3.dtype == jnp.bfloat16
    assert jnp.allclose(out3[:, :output_size].astype(jnp.float32),
                        reference_forward_bf16(x2, params),
                        atol=5e-2, rtol=5e-2)
    assert jnp.all(out3[:, output_size:] == 0)

    print("KERNEL_OK")
</pallas_src>

<mosaic_0001>
module attributes {stable_mosaic.version = 11 : i64} {
  func.func @mlp_kernel(%arg0: i32, %arg1: memref<8x32xf32, #tpu.memory_space<vmem>>, %arg2: memref<32x128xbf16, #tpu.memory_space<vmem>>, %arg3: memref<128x256xbf16, #tpu.memory_space<vmem>>, %arg4: memref<256x128xbf16, #tpu.memory_space<vmem>>, %arg5: memref<1x512xf32, #tpu.memory_space<vmem>>, %arg6: memref<8x128xf32, #tpu.memory_space<vmem>>) attributes {dimension_semantics = [#tpu.dimension_semantics<parallel>], iteration_bounds = array<i64: 1>, scalar_prefetch = 0 : i64, scratch_operands = 0 : i64, tpu.core_type = #tpu.core_type<tc>, window_params = [{transform_indices = @transform_0, window_bounds = array<i64: 8, 32>}, {pipeline_mode = #tpu.pipeline_mode<synchronous>, transform_indices = @transform_1, window_bounds = array<i64: 32, 128>}, {pipeline_mode = #tpu.pipeline_mode<synchronous>, transform_indices = @transform_2, window_bounds = array<i64: 128, 256>}, {pipeline_mode = #tpu.pipeline_mode<synchronous>, transform_indices = @transform_3, window_bounds = array<i64: 256, 128>}, {pipeline_mode = #tpu.pipeline_mode<synchronous>, transform_indices = @transform_4, window_bounds = array<i64: 1, 512>}, {transform_indices = @transform_5, window_bounds = array<i64: 8, 128>}]} {
    %c0 = arith.constant 0 : index
    %c0_0 = arith.constant 0 : index
    %0 = vector.load %arg5[%c0, %c0_0] : memref<1x512xf32, #tpu.memory_space<vmem>>, vector<1x128xf32>
    %c0_1 = arith.constant 0 : index
    %c128 = arith.constant 128 : index
    %1 = vector.load %arg5[%c0_1, %c128] : memref<1x512xf32, #tpu.memory_space<vmem>>, vector<1x256xf32>
    %c0_2 = arith.constant 0 : index
    %c384 = arith.constant 384 : index
    %2 = vector.load %arg5[%c0_2, %c384] : memref<1x512xf32, #tpu.memory_space<vmem>>, vector<1x128xf32>
    %c0_3 = arith.constant 0 : index
    %c0_4 = arith.constant 0 : index
    %3 = vector.load %arg1[%c0_3, %c0_4] : memref<8x32xf32, #tpu.memory_space<vmem>>, vector<8x32xf32>
    %4 = arith.truncf %3 : vector<8x32xf32> to vector<8x32xbf16>
    %c0_5 = arith.constant 0 : index
    %c0_6 = arith.constant 0 : index
    %5 = vector.load %arg2[%c0_5, %c0_6] : memref<32x128xbf16, #tpu.memory_space<vmem>>, vector<32x128xbf16>
    %cst = arith.constant dense<0.000000e+00> : vector<8x128xf32>
    %6 = tpu.matmul %4, %5, %cst {dimension_numbers = #tpu.dot_dimension_numbers<[1], [0], [0], [1], [0, 0, 1, 1], [], []>} : vector<8x32xbf16>, vector<32x128xbf16>, vector<8x128xf32> -> vector<8x128xf32>
    %7 = vector.broadcast %0 : vector<1x128xf32> to vector<8x128xf32>
    %8 = arith.addf %6, %7 : vector<8x128xf32>
    %cst_7 = arith.constant 0.000000e+00 : f32
    %9 = vector.broadcast %cst_7 : f32 to vector<8x128xf32>
    %10 = arith.maximumf %8, %9 : vector<8x128xf32>
    %11 = arith.truncf %10 : vector<8x128xf32> to vector<8x128xbf16>
    %c0_8 = arith.constant 0 : index
    %c0_9 = arith.constant 0 : index
    %12 = vector.load %arg3[%c0_8, %c0_9] : memref<128x256xbf16, #tpu.memory_space<vmem>>, vector<128x256xbf16>
    %cst_10 = arith.constant dense<0.000000e+00> : vector<8x256xf32>
    %13 = tpu.matmul %11, %12, %cst_10 {dimension_numbers = #tpu.dot_dimension_numbers<[1], [0], [0], [1], [0, 0, 1, 1], [], []>} : vector<8x128xbf16>, vector<128x256xbf16>, vector<8x256xf32> -> vector<8x256xf32>
    %14 = vector.broadcast %1 : vector<1x256xf32> to vector<8x256xf32>
    %15 = arith.addf %13, %14 : vector<8x256xf32>
    %cst_11 = arith.constant 0.000000e+00 : f32
    %16 = vector.broadcast %cst_11 : f32 to vector<8x256xf32>
    %17 = arith.maximumf %15, %16 : vector<8x256xf32>
    %18 = arith.truncf %17 : vector<8x256xf32> to vector<8x256xbf16>
    %c0_12 = arith.constant 0 : index
    %c0_13 = arith.constant 0 : index
    %19 = vector.load %arg4[%c0_12, %c0_13] : memref<256x128xbf16, #tpu.memory_space<vmem>>, vector<256x128xbf16>
    %cst_14 = arith.constant dense<0.000000e+00> : vector<8x128xf32>
    %20 = tpu.matmul %18, %19, %cst_14 {dimension_numbers = #tpu.dot_dimension_numbers<[1], [0], [0], [1], [0, 0, 1, 1], [], []>} : vector<8x256xbf16>, vector<256x128xbf16>, vector<8x128xf32> -> vector<8x128xf32>
    %21 = vector.broadcast %2 : vector<1x128xf32> to vector<8x128xf32>
    %22 = arith.addf %20, %21 : vector<8x128xf32>
    %c0_15 = arith.constant 0 : index
    %c0_16 = arith.constant 0 : index
    %23 = vector.load %arg6[%c0_15, %c0_16] : memref<8x128xf32, #tpu.memory_space<vmem>>, vector<8x128xf32>
    tpu.vector_store %arg6[%c0_15, %c0_16], %22 {strides = array<i32>} : memref<8x128xf32, #tpu.memory_space<vmem>>, vector<8x128xf32>,
    return
  }
  func.func @transform_0(%arg0: i32) -> (i32, i32) {
    %c0_i32 = arith.constant 0 : i32
    %c0_i32_0 = arith.constant 0 : i32
    return %arg0, %c0_i32 : i32, i32
  }
  func.func @transform_1(%arg0: i32) -> (i32, i32) {
    %c0_i32 = arith.constant 0 : i32
    %c0_i32_0 = arith.constant 0 : i32
    %c0_i32_1 = arith.constant 0 : i32
    return %c0_i32, %c0_i32_0 : i32, i32
  }
  func.func @transform_2(%arg0: i32) -> (i32, i32) {
    %c0_i32 = arith.constant 0 : i32
    %c0_i32_0 = arith.constant 0 : i32
    %c0_i32_1 = arith.constant 0 : i32
    return %c0_i32, %c0_i32_0 : i32, i32
  }
  func.func @transform_3(%arg0: i32) -> (i32, i32) {
    %c0_i32 = arith.constant 0 : i32
    %c0_i32_0 = arith.constant 0 : i32
    %c0_i32_1 = arith.constant 0 : i32
    return %c0_i32, %c0_i32_0 : i32, i32
  }
  func.func @transform_4(%arg0: i32) -> (i32, i32) {
    %c0_i32 = arith.constant 0 : i32
    %c0_i32_0 = arith.constant 0 : i32
    %c0_i32_1 = arith.constant 0 : i32
    return %c0_i32, %c0_i32_0 : i32, i32
  }
  func.func @transform_5(%arg0: i32) -> (i32, i32) {
    %c0_i32 = arith.constant 0 : i32
    %c0_i32_0 = arith.constant 0 : i32
    return %arg0, %c0_i32 : i32, i32
  }
}

</mosaic_0001>

<bundles_post_ra>
// kernel: tpu_custom_call.1
= control target key start
LH: loop header
LB: loop body
LE: loop exit
PB: predicated region body
PF: predicated region fallthrough
CT: control target
= control target key end

     0   :  { %10 = vsyncpa [#allocation3], 0  ;;  %s851_s0 = inlined_call_operand.hbm [shape: f32[8,32], index: 0, kind: input, shape index: {}]   ;;  %s852_s1 = inlined_call_operand.hbm [shape: bf16[32,128], index: 1, kind: input, shape index: {}]   ;;  %s853_s2 = inlined_call_operand.hbm [shape: bf16[128,256], index: 2, kind: input, shape index: {}]   ;;  %s854_s3 = inlined_call_operand.hbm [shape: bf16[256,128], index: 3, kind: input, shape index: {}]   ;;  %s855_s4 = inlined_call_operand.vmem [shape: f32[1,512], index: 4, kind: input, shape index: {}]   ;;  %s856_s5 = inlined_call_operand.hbm [shape: f32[8,128], index: 5, kind: output, shape index: {}]  }
   0x1   :  { %11 = vsyncpa [#allocation6], 0 }
   0x2   :  { %12 = vsyncpa [#allocation9], 0 }
   0x3   :  { %13 = vsyncpa [#allocation4], 0  ;;  %s734_s18 = smov [#allocation5]   ;;  %s616_s22 = scalar_lea.hbm %s852_s1, 256 }
   0x4   :  { %s29_s19 = sshll.u32 %s734_s18, 4  ;;  %p617_p0 = scmp.ne.s32.totalorder %s852_s1, %s616_s22  ;;  %s30_s19 = int_to_ptr.vmem [resolvable:$true] %s29_s19 }
   0x5   :  { %p620_p1 = scmp.lt.u32.totalorder %s616_s22, %s852_s1 }
   0x7   :  { %p622_p2 = pnand %p620_p1, %p617_p0 }
   0x9   :  { %625 = shalt.err (!%p622_p2)
}
   0xa   :  { %s626_s27 = scalar_lea.vmem %s30_s19, 256  ;;  %p631_p4 = scmp.lt.s32.totalorder %s30_s19, %s30_s19 }
   0xb   :  { %p627_p3 = scmp.ne.s32.totalorder %s30_s19, %s626_s27  ;;  %p632_p5 = scmp.lt.s32.totalorder %s626_s27, %s626_s27 }
   0xd   :  { %p633_p6 = por %p632_p5, %p631_p4 }
   0xf   :  { %p634_p7 = pnand %p633_p6, %p627_p3 }
  0x11   :  { %637 = shalt.err (!%p634_p7)
}
  0x12   :  { %s735_s28 = smov 64   ;;  %s736_s29 = smov 4  }
  0x13   :  { %35 = dma.hbm_to_vmem [thread:$0]  %s852_s1, 256, %s30_s19, [#allocation6], %s735_s28, %s735_s28, %s736_s29  }
  0x14   :  { %s737_s7 = smov [#allocation2]   ;;  %s738_s9 = smov [#allocation7]  }
  0x15   :  { %s20_s8 = sshll.u32 %s737_s7, 4  ;;  %s41_s10 = sshll.u32 %s738_s9, 4  ;;  %s21_s8 = int_to_ptr.vmem [resolvable:$true] %s20_s8  ;;  %s42_s10 = int_to_ptr.vmem [resolvable:$true] %s41_s10 }
  0x16   :  { %s638_s13 = scalar_lea.hbm %s851_s0, 128 }
  0x17   :  { %p639_p8 = scmp.ne.s32.totalorder %s851_s0, %s638_s13  ;;  %p642_p9 = scmp.lt.u32.totalorder %s638_s13, %s851_s0 }
  0x19   :  { %p644_p10 = pnand %p642_p9, %p639_p8 }
  0x1b   :  { %647 = shalt.err (!%p644_p10)
}
  0x1c   :  { %s648_s1 = scalar_lea.vmem %s21_s8, 128  ;;  %p653_p12 = scmp.lt.s32.totalorder %s21_s8, %s21_s8 }
  0x1d   :  { %p649_p11 = scmp.ne.s32.totalorder %s21_s8, %s648_s1  ;;  %p654_p13 = scmp.lt.s32.totalorder %s648_s1, %s648_s1 }
  0x1f   :  { %p655_p0 = por %p654_p13, %p653_p12 }
  0x21   :  { %p656_p1 = pnand %p655_p0, %p649_p11 }
  0x23   :  { %659 = shalt.err (!%p656_p1)
}
  0x24   :  { %23 = dma.hbm_to_vmem [thread:$0]  %s851_s0, 128, %s21_s8, [#allocation3]  }
  0x25   :  { %s660_s22 = scalar_lea.hbm %s853_s2, 2048 }
  0x26   :  { %p661_p2 = scmp.ne.s32.totalorder %s853_s2, %s660_s22  ;;  %p664_p3 = scmp.lt.u32.totalorder %s660_s22, %s853_s2 }
  0x28   :  { %p666_p4 = pnand %p664_p3, %p661_p2 }
  0x2a   :  { %669 = shalt.err (!%p666_p4)
}
  0x2b   :  { %s670_s27 = scalar_lea.vmem %s42_s10, 2048  ;;  %p675_p6 = scmp.lt.s32.totalorder %s42_s10, %s42_s10 }
  0x2c   :  { %p671_p5 = scmp.ne.s32.totalorder %s42_s10, %s670_s27  ;;  %p676_p7 = scmp.lt.s32.totalorder %s670_s27, %s670_s27 }
  0x2e   :  { %p677_p8 = por %p676_p7, %p675_p6 }
  0x30   :  { %p678_p9 = pnand %p677_p8, %p671_p5 }
  0x32   :  { %681 = shalt.err (!%p678_p9)
}
  0x33   :  { %s739_s0 = smov 128   ;;  %s740_s30 = smov 8  }
  0x34   :  { %47 = dma.hbm_to_vmem [thread:$0]  %s853_s2, 2048, %s42_s10, [#allocation6], %s739_s0, %s739_s0, %s740_s30  }
  0x35   :  { %s741_s8 = smov [#allocation8]   ;;  %s682_s13 = scalar_lea.hbm %s854_s3, 2048 }
  0x36   :  { %s53_s9 = sshll.u32 %s741_s8, 4  ;;  %p683_p10 = scmp.ne.s32.totalorder %s854_s3, %s682_s13  ;;  %s54_s9 = int_to_ptr.vmem [resolvable:$true] %s53_s9 }
  0x37   :  { %p686_p11 = scmp.lt.u32.totalorder %s682_s13, %s854_s3 }
  0x39   :  { %p688_p12 = pnand %p686_p11, %p683_p10 }
  0x3b   :  { %691 = shalt.err (!%p688_p12)
}
  0x3c   :  { %s692_s1 = scalar_lea.vmem %s54_s9, 2048  ;;  %p697_p0 = scmp.lt.s32.totalorder %s54_s9, %s54_s9 }
  0x3d   :  { %p693_p13 = scmp.ne.s32.totalorder %s54_s9, %s692_s1  ;;  %p698_p1 = scmp.lt.s32.totalorder %s692_s1, %s692_s1 }
  0x3f   :  { %p699_p2 = por %p698_p1, %p697_p0 }
  0x41   :  { %p700_p3 = pnand %p699_p2, %p693_p13 }
  0x43   :  { %703 = shalt.err (!%p700_p3)
}
  0x44   :  { %59 = dma.hbm_to_vmem [thread:$0]  %s854_s3, 2048, %s54_s9, [#allocation9], %s735_s28, %s735_s28, %s736_s29  }
  0x45   :  { %726 = dma.done.wait [#allocation3], 128  }
  0x46   :  { %727 = vsyncadd [#allocation3], 4294967168 }
  0x47   :  { %728 = dma.done.wait [#allocation6], 2304  }
  0x48   :  { %729 = vsyncadd [#allocation6], 4294964992 }
  0x49   :  { %730 = dma.done.wait [#allocation9], 2048  }
  0x4a   :  { %731 = vsyncadd [#allocation9], 4294965248  ;;  %v742_v0 = vmov 0.0   ;;  %vm743_vm0 = vmmov 0   ;;  %v574_v1 = vld [vmem:[#allocation5] sm:$0xff]   ;;  %v575_v2 = vld [vmem:[#allocation5 + $0x8] sm:$0xff]   ;;  %v165_v46 = vlaneseq }
  0x4b   :  { %554 = vmatprep.subr.bf16.mxu0 %v742_v0  ;;  %558 = vmatprep.mubr.msk.bf16.mxu0 %vm743_vm0, %v742_v0  ;;  %v78_v3 = vld [vmem:[#allocation2] sm:$0xff]  ;;  %v579_v6 = vld [vmem:[#allocation7 + $0x14] ss:$8 sps:$4 sm:$0xff]   ;;  %vm102_vm1 = vcmask 261120   ;;  %v581_v8 = vld [vmem:[#allocation7 + $0x10] ss:$8 sps:$4 sm:$0xff]  }
  0x4c   :  { %555 = vmatpush3.bf16.msra.mxu0 %v574_v1  ;;  %v576_v4 = vld [vmem:[#allocation7 + $0x4] ss:$8 sps:$4 sm:$0xff]   ;;  %v578_v5 = vld [vmem:[#allocation7] ss:$8 sps:$4 sm:$0xff]   ;;  %v79_v7 = vpack.c.bf16 %v78_v3, %v78_v3  ;;  %v585_v11 = vld [vmem:[#allocation7 + $0x34] ss:$8 sps:$4 sm:$0xff]  }
  0x4d   :  { %556 = vmatprep.subr.bf16.mxu0 %v742_v0  ;;  %255 = vmatprep.subr.bf16.mxu1 %v576_v4  ;;  %v582_v9 = vld [vmem:[#allocation7 + $0x24] ss:$8 sps:$4 sm:$0xff]   ;;  %v584_v10 = vld [vmem:[#allocation7 + $0x20] ss:$8 sps:$4 sm:$0xff]   ;;  %v587_v12 = vld [vmem:[#allocation7 + $0x30] ss:$8 sps:$4 sm:$0xff]  }
  0x4e   :  { %256 = vmatpush1.bf16.msra.mxu1 %v578_v5  ;;  %v588_v13 = vld [vmem:[#allocation7 + $0x44] ss:$8 sps:$4 sm:$0xff]   ;;  %v590_v14 = vld [vmem:[#allocation7 + $0x40] ss:$8 sps:$4 sm:$0xff]   ;;  %v591_v15 = vld [vmem:[#allocation7 + $0x54] ss:$8 sps:$4 sm:$0xff]  }
  0x4f   :  { %257 = vmatprep.subr.bf16.mxu1 %v579_v6  ;;  %v593_v16 = vld [vmem:[#allocation7 + $0x50] ss:$8 sps:$4 sm:$0xff]   ;;  %v594_v17 = vld [vmem:[#allocation7 + $0x64] ss:$8 sps:$4 sm:$0xff]   ;;  %v596_v18 = vld [vmem:[#allocation7 + $0x60] ss:$8 sps:$4 sm:$0xff]  }
  0x50   :  { %557 = vmatpush3.bf16.msra.mxu0 %v575_v2  ;;  %v597_v19 = vld [vmem:[#allocation7 + $0x74] ss:$8 sps:$4 sm:$0xff]   ;;  %v599_v20 = vld [vmem:[#allocation7 + $0x70] ss:$8 sps:$4 sm:$0xff]   ;;  %v744_v21 = vmov 0   ;;  %v600_v22 = vld [vmem:[#allocation8 + $0x40] sm:$0xff]  }
  0x51   :  { %287 = vmatprep.mubr.bf16.mxu1 %v744_v21  ;;  %v601_v23 = vld [vmem:[#allocation8] sm:$0xff]   ;;  %v602_v24 = vld [vmem:[#allocation8 + $0x48] sm:$0xff]   ;;  %532 = vmatprep.subr.bf16.mxu0 %v600_v22  ;;  %v604_v26 = vld [vmem:[#allocation8 + $0x50] sm:$0xff]   ;;  %v166_v47 = vshrl.u32 %v165_v46, 7  ;;  %s745_s21 = smov [#allocation10]  }
  0x52   :  { %258 = vmatpush1.bf16.msra.mxu1 %v581_v8  ;;  %v603_v25 = vld [vmem:[#allocation8 + $0x8] sm:$0xff]   ;;  %v605_v27 = vld [vmem:[#allocation8 + $0x10] sm:$0xff]   ;;  %v606_v28 = vld [vmem:[#allocation8 + $0x58] sm:$0xff]   ;;  %s481_s22 = sshll.u32 %s745_s21, 4  ;;  %s482_s22 = int_to_ptr.vmem [resolvable:$true] %s481_s22 }
  0x53   :  { %559 = vmatmul.mubr.msk.bf16.vlgmr.msra.gmra.mrb[0].mxu0 %vm102_vm1, %v79_v7  ;;  %259 = vmatprep.subr.bf16.mxu1 %v582_v9  ;;  %v607_v29 = vld [vmem:[#allocation8 + $0x18] sm:$0xff]   ;;  %v608_v30 = vld [vmem:[#allocation8 + $0x60] sm:$0xff]   ;;  %v610_v32 = vld [vmem:[#allocation8 + $0x68] sm:$0xff]   ;;  %v167_v48 = vsub.s32 0, %v166_v47  ;;  %v171_v50 = vsub.s32 1, %v166_v47  ;;  %s704_s23 = scalar_lea.vmem %s482_s22, 128  ;;  %p709_p5 = scmp.lt.s32.totalorder %s482_s22, %s482_s22 }
  0x54   :  { %533 = vmatpush3.bf16.msra.mxu0 %v601_v23  ;;  %v609_v31 = vld [vmem:[#allocation8 + $0x20] sm:$0xff]   ;;  %v611_v33 = vld [vmem:[#allocation8 + $0x28] sm:$0xff]   ;;  %v612_v42 = vld [vmem:[#allocation8 + $0x70] sm:$0xff]   ;;  %p705_p4 = scmp.ne.s32.totalorder %s482_s22, %s704_s23  ;;  %p710_p6 = scmp.lt.s32.totalorder %s704_s23, %s704_s23 }
  0x55   :  { %534 = vmatprep.subr.bf16.mxu0 %v602_v24  ;;  %v492_v34 = vld [vmem:[%s855_s4] ss:$0 sm:$0xff]  ;;  %v613_v43 = vld [vmem:[#allocation8 + $0x30] sm:$0xff]   ;;  %v614_v44 = vld [vmem:[#allocation8 + $0x78] sm:$0xff]  }
  0x56   :  { %260 = vmatpush1.bf16.msra.mxu1 %v584_v10  ;;  %v615_v45 = vld [vmem:[#allocation8 + $0x38] sm:$0xff]   ;;  %v76_v49 = vld [vmem:[%s855_s4 + $0x1] sm:$0x3]  ;;  %v512_v0 = vld [vmem:[%s855_s4 + $0x3] ss:$0 sm:$0xff]  ;;  %p711_p7 = por %p710_p6, %p709_p5 }
  0x57   :  { %261 = vmatprep.subr.bf16.mxu1 %v585_v11  ;;  %v168_v51 = vrot.slane %v76_v49, %v167_v48  ;;  %v172_v52 = vrot.slane %v76_v49, %v171_v50 }
  0x58   :  { %535 = vmatpush3.bf16.msra.mxu0 %v603_v25  ;;  %p712_p8 = pnand %p711_p7, %p705_p4 }
  0x59   :  { %536 = vmatprep.subr.bf16.mxu0 %v604_v26 }
  0x5a   :  { %262 = vmatpush1.bf16.msra.mxu1 %v587_v12 }
  0x5b   :  { %263 = vmatprep.subr.bf16.mxu1 %v588_v13 }
  0x5c   :  { %537 = vmatpush3.bf16.msra.mxu0 %v605_v27 }
  0x5d   :  { %538 = vmatprep.subr.bf16.mxu0 %v606_v28 }
  0x5e   :  { %264 = vmatpush1.bf16.msra.mxu1 %v590_v14 }
  0x5f   :  { %265 = vmatprep.subr.bf16.mxu1 %v591_v15 }
  0x60   :  { %539 = vmatpush3.bf16.msra.mxu0 %v607_v29 }
  0x61   :  { %540 = vmatprep.subr.bf16.mxu0 %v608_v30 }
  0x62   :  { %266 = vmatpush1.bf16.msra.mxu1 %v593_v16 }
  0x63   :  { %267 = vmatprep.subr.bf16.mxu1 %v594_v17 }
  0x64   :  { %541 = vmatpush3.bf16.msra.mxu0 %v609_v31 }
  0x65   :  { %542 = vmatprep.subr.bf16.mxu0 %v610_v32 }
  0x66   :  { %268 = vmatpush1.bf16.msra.mxu1 %v596_v18 }
  0x67   :  { %269 = vmatprep.subr.bf16.mxu1 %v597_v19 }
  0x68   :  { %543 = vmatpush3.bf16.msra.mxu0 %v611_v33 }
  0x69   :  { %544 = vmatprep.subr.bf16.mxu0 %v612_v42 }
  0x6a   :  { %270 = vmatpush1.bf16.msra.mxu1 %v599_v20 }
  0x6c   :  { %545 = vmatpush3.bf16.msra.mxu0 %v613_v43 }
  0x6d   :  { %546 = vmatprep.subr.bf16.mxu0 %v614_v44 }
  0x70   :  { %547 = vmatpush3.bf16.msra.mxu0 %v615_v45 }
 0x126   :  { %v140_v35 = vpop.f32.mrb[0].mxu0 }
 0x127   :  { %v141_v36 = vadd.f32 %v492_v34, %v140_v35  ;;  %v560_v37 = vpop.f32.mrb[1].mxu0 }
 0x128   :  { %v143_v38 = vpop.f32.mrb[2].mxu0 }
 0x129   :  { %v146_v39 = vmax.f32 %v141_v36, 0.0  ;;  %v561_v40 = vpop.f32.mrb[3].mxu0 }
 0x12b   :  { %v147_v41 = vpack.c.bf16 %v146_v39, %v146_v39 }
 0x12d   :  { %288 = vmatmul.mubr.bf16.vlgmr.msra.gmra.mrb[0].mxu1 %v147_v41 }
 0x200   :  { %v289_v53 = vpop.f32.mrb[0].mxu1 }
 0x201   :  { %v290_v54 = vadd.f32 %v289_v53, %v168_v51  ;;  %v291_v55 = vpop.f32.mrb[1].mxu1 }
 0x202   :  { %v292_v56 = vadd.f32 %v291_v55, %v172_v52  ;;  %v293_v57 = vpop.f32.mrb[2].mxu1 }
 0x203   :  { %v296_v58 = vmax.f32 %v290_v54, 0.0  ;;  %v294_v59 = vpop.f32.mrb[3].mxu1 }
 0x204   :  { %v297_v60 = vmax.f32 %v292_v56, 0.0 }
 0x205   :  { %v298_v62 = vpack.c.bf16 %v296_v58, %v296_v58 }
 0x206   :  { %v299_v61 = vpack.c.bf16 %v297_v60, %v297_v60 }
 0x208   :  { %466 = vmatprep.mubr.bf16.mxu0 %v299_v61 }
 0x209   :  { %467 = vmatmul.mubr.bf16.vlgmr.msra.gmra.mrb[4].mxu0 %v298_v62 }
 0x2dc   :  { %v548_v63 = vpop.f32.mrb[4].mxu0 }
 0x2dd   :  { %v549_v1 = vpop.f32.mrb[5].mxu0 }
 0x2de   :  { %v550_v2 = vadd.f32 %v549_v1, %v548_v63  ;;  %v551_v3 = vpop.f32.mrb[6].mxu0 }
 0x2df   :  { %v552_v4 = vpop.f32.mrb[7].mxu0 }
 0x2e0   :  { %v469_v5 = vadd.f32 %v550_v2, %v512_v0 }
 0x2e2   :  { %474 = vst [vmem:[#allocation10] sm:$0xff] %v469_v5 }
 0x2e3   :  { %715 = shalt.err (!%p712_p8)
}
 0x2e4   :  { %s716_s4 = scalar_lea.hbm %s856_s5, 128 }
 0x2e5   :  { %p717_p9 = scmp.ne.s32.totalorder %s856_s5, %s716_s4  ;;  %p720_p10 = scmp.lt.u32.totalorder %s716_s4, %s856_s5 }
 0x2e7   :  { %p722_p11 = pnand %p720_p10, %p717_p9 }
 0x2e9   :  { %725 = shalt.err (!%p722_p11)
}
 0x2ea   :  { %484 = dma.vmem_to_hbm [thread:$0]  %s482_s22, 128, %s856_s5, [#allocation4]  }
 0x2eb   :  { %732 = dma.done.wait [#allocation4], 128  }
 0x2ec   :  { %733 = vsyncadd [#allocation4], 4294967168 }
 0x2ed   :  { %488 = vsyncpa [#allocation3], 1 }
 0x2ee   :  { %489 = vsyncpa [#allocation6], 1 }
 0x2ef   :  { %490 = vsyncpa [#allocation9], 1 }
 0x2f0   :  { %491 = vsyncpa [#allocation4], 1 }

</bundles_post_ra>
